<compile_context>
chip_gen: v7x
topology: tpu7x:2x2x1
jax: 0.10.0
libtpu: 0.0.40
codegen_flags: <defaults>
</compile_context>

<pallas_src>
import functools

import jax
import jax.numpy as jnp
from jax import lax
from jax.experimental import pallas as pl
from jax.experimental.pallas import tpu as pltpu

_LANES = 128
_SUBLANES = 8
_MAX_BLOCK_ROWS = 2048       # 2048x128 f32 block = 1 MiB; huge VMEM headroom
_MIN_KERNEL_ELEMS = 16384    # below this, XLA-fused jnp is already optimal


def _focal_loss_ref(logits, label, alpha=0.25, gamma=2.0, reduction="mean"):
    """Pure-jnp reference (also used as the small-n fallback)."""
    x = logits.astype(jnp.float32)
    probs = jax.nn.sigmoid(x)
    log_probs = jax.nn.log_sigmoid(x)
    log_1_probs = jax.nn.log_sigmoid(-x)
    coeff = jnp.where(label == 1, alpha, 1.0 - alpha)
    term1 = (1.0 - probs) ** gamma * log_probs
    term2 = probs ** gamma * log_1_probs
    loss = -coeff * jnp.where(label == 1, term1, term2)
    if reduction == "mean":
        return loss.mean()
    return loss.sum()


def _focal_kernel(x_ref, lbl_ref, out_ref, acc_ref, *,
                  alpha, gamma, inv_divisor, block_rows, valid_rows_last):
    c = pl.program_id(0)
    last = pl.num_programs(0) - 1

    @pl.when(c == 0)
    def _():
        acc_ref[...] = jnp.zeros_like(acc_ref)

    x = x_ref[...].astype(jnp.float32)
    # Compare the label ref directly in its native dtype (no cast on the VPU).
    is_pos = lbl_ref[...] == jnp.asarray(1, dtype=lbl_ref.dtype)

    # One shared exp(-|x|) feeds sigmoid and both stable log-sigmoid terms.
    e = jnp.exp(-jnp.abs(x))
    inv_1pe = 1.0 / (1.0 + e)
    probs = jnp.where(x >= 0.0, inv_1pe, e * inv_1pe)          # sigmoid(x)
    log1p_e = jnp.log1p(e)
    log_probs = jnp.minimum(x, 0.0) - log1p_e                  # log(sigmoid(x))
    log_1_probs = -jnp.maximum(x, 0.0) - log1p_e               # log(1-sigmoid(x))

    one_m_probs = 1.0 - probs
    if gamma == 2.0:
        probs_gamma = probs * probs
        probs_1_gamma = one_m_probs * one_m_probs
    elif float(gamma).is_integer() and gamma >= 0:
        probs_gamma = lax.integer_pow(probs, int(gamma))
        probs_1_gamma = lax.integer_pow(one_m_probs, int(gamma))
    else:
        probs_gamma = probs ** gamma
        probs_1_gamma = one_m_probs ** gamma

    coeff = jnp.where(is_pos, jnp.float32(alpha), jnp.float32(1.0 - alpha))
    loss = -coeff * jnp.where(is_pos, probs_1_gamma * log_probs,
                              probs_gamma * log_1_probs)

    if valid_rows_last == block_rows:
        # No ragged tail anywhere: hot path is pure VPU adds, no masking.
        acc_ref[...] += loss
    else:
        # Only the last chunk is partial; keep the mask on the cold path.
        @pl.when(c < last)
        def _():
            acc_ref[...] += loss

        @pl.when(c == last)
        def _():
            # Row-level comparison (values < block_rows, no int32 overflow);
            # where() is a true select, so undefined/NaN tail rows become 0.
            row_ids = lax.broadcasted_iota(jnp.int32, (block_rows, _LANES), 0)
            acc_ref[...] += jnp.where(row_ids < valid_rows_last, loss,
                                      jnp.float32(0.0))

    @pl.when(c == last)
    def _():
        # Single cross-lane reduction; lane-dense output block written once.
        total = jnp.sum(acc_ref[...]) * jnp.float32(inv_divisor)
        out_ref[...] = jnp.broadcast_to(total, out_ref.shape)


def focal_loss_v2(logits, label, *, alpha=0.25, gamma=2.0, reduction="mean",
                  max_block_rows=_MAX_BLOCK_ROWS,
                  min_kernel_elems=_MIN_KERNEL_ELEMS):
    """JAX/Pallas equivalent of FocalLossV2(alpha, gamma, reduction)(logits, label)."""
    assert logits.shape == label.shape
    n = logits.size

    if reduction == "mean":
        inv_divisor = 1.0 / float(n)
    elif reduction == "sum":
        inv_divisor = 1.0
    else:
        # TODO(synk): reduction='none' (full per-element map output) not wired
        # up; the module default is 'mean'.
        raise NotImplementedError("only 'mean' and 'sum' reductions supported")

    if n < min_kernel_elems:
        # Kernel launch + wrapper overhead dominates tiny inputs.
        return _focal_loss_ref(logits, label, alpha, gamma, reduction)

    rows = pl.cdiv(n, _LANES)
    n_pad = rows * _LANES
    x_flat = logits.reshape(-1)
    lbl_flat = label.reshape(-1)
    if n_pad != n:
        # Fallback path only when n % 128 != 0: pad to the *next 128* with
        # logit=-100 / label=0 so the padded elements contribute exactly 0
        # (probs**gamma underflows to 0, log_1_probs ~= 0) -- no lane mask.
        x_flat = jnp.pad(x_flat, (0, n_pad - n), constant_values=-100.0)
        lbl_flat = jnp.pad(lbl_flat, (0, n_pad - n), constant_values=0)
    # Lane-dense slab; a free metadata reshape when no padding happened.
    x2d = x_flat.reshape(rows, _LANES)
    lbl2d = lbl_flat.reshape(rows, _LANES)

    max_block_rows = max(_SUBLANES, (max_block_rows // _SUBLANES) * _SUBLANES)
    if rows <= max_block_rows:
        block_rows = rows            # full-dim block: always layout-legal
    else:
        block_rows = max_block_rows  # multiple of 8
    chunks = pl.cdiv(rows, block_rows)
    valid_rows_last = rows - (chunks - 1) * block_rows

    kernel = functools.partial(
        _focal_kernel,
        alpha=float(alpha), gamma=float(gamma), inv_divisor=inv_divisor,
        block_rows=block_rows, valid_rows_last=valid_rows_last)

    in_spec = pl.BlockSpec((block_rows, _LANES), lambda c: (c, 0))

    out = pl.pallas_call(
        kernel,
        out_shape=jax.ShapeDtypeStruct((_SUBLANES, _LANES), jnp.float32),
        grid_spec=pltpu.PrefetchScalarGridSpec(
            num_scalar_prefetch=0,
            grid=(chunks,),
            in_specs=[in_spec, in_spec],
            out_specs=pl.BlockSpec((_SUBLANES, _LANES), lambda c: (0, 0)),
            scratch_shapes=[pltpu.VMEM((block_rows, _LANES), jnp.float32)],
        ),
        compiler_params=pltpu.CompilerParams(
            dimension_semantics=("arbitrary",)),
    )(x2d, lbl2d)

    return out[0, 0]


if __name__ == "__main__":
    key = jax.random.PRNGKey(0)
    k1, k2, k3, k4 = jax.random.split(key, 4)

    # 1) Typical conv-head NCHW shape; n % 128 == 0 -> zero-copy reshape path.
    shape = (2, 4, 16, 16)
    logits = jax.random.normal(k1, shape, dtype=jnp.float32) * 3.0
    label = jax.random.bernoulli(k2, p=0.25, shape=shape).astype(jnp.float32)
    loss = jax.block_until_ready(
        focal_loss_v2(logits, label, min_kernel_elems=0))
    ref = _focal_loss_ref(logits, label)
    assert jnp.allclose(loss, ref, rtol=1e-5, atol=1e-6), (loss, ref)

    # Small-n pure-jnp fallback (default threshold) agrees too.
    loss_fb = jax.block_until_ready(focal_loss_v2(logits, label))
    assert jnp.allclose(loss_fb, ref, rtol=1e-6, atol=1e-7), (loss_fb, ref)

    # 2) Ragged size (n % 128 != 0): exercises the minimal-pad fallback; 'sum'.
    shape2 = (2, 4, 17, 15)
    logits2 = jax.random.normal(k3, shape2, dtype=jnp.float32) * 3.0
    label2 = jax.random.bernoulli(k4, p=0.25, shape=shape2).astype(jnp.float32)
    loss2 = jax.block_until_ready(
        focal_loss_v2(logits2, label2, reduction="sum", min_kernel_elems=0))
    ref2 = _focal_loss_ref(logits2, label2, reduction="sum")
    assert jnp.allclose(loss2, ref2, rtol=1e-5, atol=1e-5), (loss2, ref2)

    # 3) Multi-chunk grid with a partial last block (cold-path row mask),
    #    bf16 logits streamed without wrapper upcast.
    shape3 = (2, 4, 16, 20)   # 2560 elems -> 20 rows of 128
    logits3 = jax.random.normal(k1, shape3, dtype=jnp.bfloat16) * 3.0
    label3 = jax.random.bernoulli(k2, p=0.25, shape=shape3).astype(jnp.float32)
    loss3 = jax.block_until_ready(
        focal_loss_v2(logits3, label3, max_block_rows=8, min_kernel_elems=0))
    ref3 = _focal_loss_ref(logits3, label3)
    assert jnp.allclose(loss3, ref3, rtol=1e-4, atol=1e-5), (loss3, ref3)

    print("KERNEL_OK")
</pallas_src>

<mosaic_0001>
module attributes {stable_mosaic.version = 11 : i64} {
  func.func @_focal_kernel(%arg0: i32, %arg1: memref<16x128xf32, #tpu.memory_space<vmem>>, %arg2: memref<16x128xf32, #tpu.memory_space<vmem>>, %arg3: memref<8x128xf32, #tpu.memory_space<vmem>>, %arg4: memref<16x128xf32, #tpu.memory_space<vmem>>) attributes {dimension_semantics = [#tpu.dimension_semantics<arbitrary>], iteration_bounds = array<i64: 1>, scalar_prefetch = 0 : i64, scratch_operands = 1 : i64, tpu.core_type = #tpu.core_type<tc>, window_params = [{transform_indices = @transform_0, window_bounds = array<i64: 16, 128>}, {transform_indices = @transform_1, window_bounds = array<i64: 16, 128>}, {pipeline_mode = #tpu.pipeline_mode<synchronous>, transform_indices = @transform_2, window_bounds = array<i64: 8, 128>}]} {
    %c0_i32 = arith.constant 0 : i32
    %0 = arith.cmpi eq, %arg0, %c0_i32 : i32
    %1 = arith.extui %0 : i1 to i32
    %c0_i32_0 = arith.constant 0 : i32
    %2 = arith.cmpi ne, %1, %c0_i32_0 : i32
    scf.if %2 {
      %cst_21 = arith.constant 0.000000e+00 : f32
      %47 = vector.broadcast %cst_21 : f32 to vector<16x128xf32>
      %c0_22 = arith.constant 0 : index
      %c0_23 = arith.constant 0 : index
      %48 = vector.load %arg4[%c0_22, %c0_23] : memref<16x128xf32, #tpu.memory_space<vmem>>, vector<16x128xf32>
      tpu.vector_store %arg4[%c0_22, %c0_23], %47 {strides = array<i32>} : memref<16x128xf32, #tpu.memory_space<vmem>>, vector<16x128xf32>,
    } else {
    }
    %c0 = arith.constant 0 : index
    %c0_1 = arith.constant 0 : index
    %3 = vector.load %arg1[%c0, %c0_1] : memref<16x128xf32, #tpu.memory_space<vmem>>, vector<16x128xf32>
    %c0_2 = arith.constant 0 : index
    %c0_3 = arith.constant 0 : index
    %4 = vector.load %arg2[%c0_2, %c0_3] : memref<16x128xf32, #tpu.memory_space<vmem>>, vector<16x128xf32>
    %cst = arith.constant 1.000000e+00 : f32
    %5 = vector.broadcast %cst : f32 to vector<16x128xf32>
    %6 = arith.cmpf oeq, %4, %5 : vector<16x128xf32>
    %7 = math.absf %3 : vector<16x128xf32>
    %cst_4 = arith.constant 0.000000e+00 : f32
    %8 = vector.broadcast %cst_4 : f32 to vector<16x128xf32>
    %9 = arith.subf %8, %7 : vector<16x128xf32>
    %10 = math.exp %9 : vector<16x128xf32>
    %cst_5 = arith.constant 1.000000e+00 : f32
    %11 = vector.broadcast %cst_5 : f32 to vector<16x128xf32>
    %12 = arith.addf %11, %10 : vector<16x128xf32>
    %cst_6 = arith.constant 1.000000e+00 : f32
    %13 = vector.broadcast %cst_6 : f32 to vector<16x128xf32>
    %14 = arith.divf %13, %12 : vector<16x128xf32>
    %cst_7 = arith.constant 0.000000e+00 : f32
    %15 = vector.broadcast %cst_7 : f32 to vector<16x128xf32>
    %16 = arith.cmpf oge, %3, %15 : vector<16x128xf32>
    %17 = arith.mulf %10, %14 : vector<16x128xf32>
    %18 = arith.select %16, %14, %17 : vector<16x128xi1>, vector<16x128xf32>
    %19 = math.log1p %10 : vector<16x128xf32>
    %cst_8 = arith.constant 0.000000e+00 : f32
    %20 = vector.broadcast %cst_8 : f32 to vector<16x128xf32>
    %21 = arith.minimumf %3, %20 : vector<16x128xf32>
    %22 = arith.subf %21, %19 : vector<16x128xf32>
    %cst_9 = arith.constant 0.000000e+00 : f32
    %23 = vector.broadcast %cst_9 : f32 to vector<16x128xf32>
    %24 = arith.maximumf %3, %23 : vector<16x128xf32>
    %cst_10 = arith.constant 0.000000e+00 : f32
    %25 = vector.broadcast %cst_10 : f32 to vector<16x128xf32>
    %26 = arith.subf %25, %24 : vector<16x128xf32>
    %27 = arith.subf %26, %19 : vector<16x128xf32>
    %cst_11 = arith.constant 1.000000e+00 : f32
    %28 = vector.broadcast %cst_11 : f32 to vector<16x128xf32>
    %29 = arith.subf %28, %18 : vector<16x128xf32>
    %30 = arith.mulf %18, %18 : vector<16x128xf32>
    %31 = arith.mulf %29, %29 : vector<16x128xf32>
    %cst_12 = arith.constant 2.500000e-01 : f32
    %cst_13 = arith.constant 7.500000e-01 : f32
    %32 = vector.broadcast %cst_12 : f32 to vector<16x128xf32>
    %33 = vector.broadcast %cst_13 : f32 to vector<16x128xf32>
    %34 = arith.select %6, %32, %33 : vector<16x128xi1>, vector<16x128xf32>
    %cst_14 = arith.constant 0.000000e+00 : f32
    %35 = vector.broadcast %cst_14 : f32 to vector<16x128xf32>
    %36 = arith.subf %35, %34 : vector<16x128xf32>
    %37 = arith.mulf %31, %22 : vector<16x128xf32>
    %38 = arith.mulf %30, %27 : vector<16x128xf32>
    %39 = arith.select %6, %37, %38 : vector<16x128xi1>, vector<16x128xf32>
    %40 = arith.mulf %36, %39 : vector<16x128xf32>
    %c0_15 = arith.constant 0 : index
    %c0_16 = arith.constant 0 : index
    %41 = vector.load %arg4[%c0_15, %c0_16] : memref<16x128xf32, #tpu.memory_space<vmem>>, vector<16x128xf32>
    %42 = arith.addf %41, %40 : vector<16x128xf32>
    %c0_17 = arith.constant 0 : index
    %c0_18 = arith.constant 0 : index
    %43 = vector.load %arg4[%c0_17, %c0_18] : memref<16x128xf32, #tpu.memory_space<vmem>>, vector<16x128xf32>
    tpu.vector_store %arg4[%c0_17, %c0_18], %42 {strides = array<i32>} : memref<16x128xf32, #tpu.memory_space<vmem>>, vector<16x128xf32>,
    %c0_i32_19 = arith.constant 0 : i32
    %44 = arith.cmpi eq, %arg0, %c0_i32_19 : i32
    %45 = arith.extui %44 : i1 to i32
    %c0_i32_20 = arith.constant 0 : i32
    %46 = arith.cmpi ne, %45, %c0_i32_20 : i32
    scf.if %46 {
      %c0_21 = arith.constant 0 : index
      %c0_22 = arith.constant 0 : index
      %47 = vector.load %arg4[%c0_21, %c0_22] : memref<16x128xf32, #tpu.memory_space<vmem>>, vector<16x128xf32>
      %48 = vector.shape_cast %47 : vector<16x128xf32> to vector<1x16x128xf32>
      %cst_23 = arith.constant dense<0.000000e+00> : vector<1xf32>
      %49 = vector.multi_reduction <add>, %48, %cst_23 [1, 2] : vector<1x16x128xf32> to vector<1xf32>
      %50 = vector.shape_cast %49 : vector<1xf32> to vector<1x1x1xf32>
      %51 = vector.extract %50[0, 0, 0] : f32 from vector<1x1x1xf32>
      %cst_24 = arith.constant 4.8828125E-4 : f32
      %52 = arith.mulf %51, %cst_24 : f32
      %53 = vector.broadcast %52 : f32 to vector<8x128xf32>
      %c0_25 = arith.constant 0 : index
      %c0_26 = arith.constant 0 : index
      %54 = vector.load %arg3[%c0_25, %c0_26] : memref<8x128xf32, #tpu.memory_space<vmem>>, vector<8x128xf32>
      tpu.vector_store %arg3[%c0_25, %c0_26], %53 {strides = array<i32>} : memref<8x128xf32, #tpu.memory_space<vmem>>, vector<8x128xf32>,
    } else {
    }
    return
  }
  func.func @transform_0(%arg0: i32) -> (i32, i32) {
    %c0_i32 = arith.constant 0 : i32
    %c0_i32_0 = arith.constant 0 : i32
    return %arg0, %c0_i32 : i32, i32
  }
  func.func @transform_1(%arg0: i32) -> (i32, i32) {
    %c0_i32 = arith.constant 0 : i32
    %c0_i32_0 = arith.constant 0 : i32
    return %arg0, %c0_i32 : i32, i32
  }
  func.func @transform_2(%arg0: i32) -> (i32, i32) {
    %c0_i32 = arith.constant 0 : i32
    %c0_i32_0 = arith.constant 0 : i32
    %c0_i32_1 = arith.constant 0 : i32
    return %c0_i32, %c0_i32_0 : i32, i32
  }
}

</mosaic_0001>

<bundles_post_ra>
// kernel: tpu_custom_call.1
= control target key start
LH: loop header
LB: loop body
LE: loop exit
PB: predicated region body
PF: predicated region fallthrough
CT: control target
= control target key end

     0   :  { %7 = vsyncpa [#allocation4], 0  ;;  %s312_s0 = inlined_call_operand.hbm [shape: f32[16,128], index: 0, kind: input, shape index: {}]   ;;  %s313_s1 = inlined_call_operand.hbm [shape: f32[16,128], index: 1, kind: input, shape index: {}]   ;;  %s314_s2 = inlined_call_operand.hbm [shape: f32[8,128], index: 2, kind: output, shape index: {}]  }
   0x1   :  { %8 = vsyncpa [#allocation7], 0 }
   0x2   :  { %9 = vsyncpa [#allocation5], 0  ;;  %s250_s9 = smov [#allocation3]   ;;  %s178_s13 = scalar_lea.hbm %s312_s0, 256 }
   0x3   :  { %s15_s10 = sshll.u32 %s250_s9, 4  ;;  %p179_p0 = scmp.ne.s32.totalorder %s312_s0, %s178_s13  ;;  %s16_s10 = int_to_ptr.vmem [resolvable:$true] %s15_s10 }
   0x4   :  { %p182_p1 = scmp.lt.u32.totalorder %s178_s13, %s312_s0 }
   0x6   :  { %p184_p2 = pnand %p182_p1, %p179_p0 }
   0x8   :  { %187 = shalt.err (!%p184_p2)
}
   0x9   :  { %s188_s18 = scalar_lea.vmem %s16_s10, 256  ;;  %p193_p4 = scmp.lt.s32.totalorder %s16_s10, %s16_s10 }
   0xa   :  { %p189_p3 = scmp.ne.s32.totalorder %s16_s10, %s188_s18  ;;  %p194_p5 = scmp.lt.s32.totalorder %s188_s18, %s188_s18 }
   0xc   :  { %p195_p6 = por %p194_p5, %p193_p4 }
   0xe   :  { %p196_p7 = pnand %p195_p6, %p189_p3 }
  0x10   :  { %199 = shalt.err (!%p196_p7)
}
  0x11   :  { %s251_s19 = smov 128   ;;  %s252_s20 = smov 8  }
  0x12   :  { %21 = dma.hbm_to_vmem [thread:$0]  %s312_s0, 256, %s16_s10, [#allocation4], %s251_s19, %s251_s19, %s252_s20  }
  0x13   :  { %s253_s23 = smov [#allocation6]   ;;  %s200_s27 = scalar_lea.hbm %s313_s1, 256 }
  0x14   :  { %s27_s24 = sshll.u32 %s253_s23, 4  ;;  %p201_p8 = scmp.ne.s32.totalorder %s313_s1, %s200_s27  ;;  %s28_s24 = int_to_ptr.vmem [resolvable:$true] %s27_s24 }
  0x15   :  { %p204_p9 = scmp.lt.u32.totalorder %s200_s27, %s313_s1 }
  0x17   :  { %p206_p10 = pnand %p204_p9, %p201_p8 }
  0x19   :  { %209 = shalt.err (!%p206_p10)
}
  0x1a   :  { %s210_s4 = scalar_lea.vmem %s28_s24, 256  ;;  %p215_p12 = scmp.lt.s32.totalorder %s28_s24, %s28_s24 }
  0x1b   :  { %p211_p11 = scmp.ne.s32.totalorder %s28_s24, %s210_s4  ;;  %p216_p13 = scmp.lt.s32.totalorder %s210_s4, %s210_s4 }
  0x1d   :  { %p217_p0 = por %p216_p13, %p215_p12 }
  0x1f   :  { %p218_p1 = pnand %p217_p0, %p211_p11 }
  0x21   :  { %221 = shalt.err (!%p218_p1)
}
  0x22   :  { %33 = dma.hbm_to_vmem [thread:$0]  %s313_s1, 256, %s28_s24, [#allocation7], %s251_s19, %s251_s19, %s252_s20  }
  0x23   :  { %244 = dma.done.wait [#allocation4], 256  }
  0x24   :  { %245 = vsyncadd [#allocation4], 4294967040 }
  0x25   :  { %246 = dma.done.wait [#allocation7], 256  }
  0x26   :  { %247 = vsyncadd [#allocation7], 4294967040  ;;  %v46_v0 = vld [vmem:[#allocation3] sm:$0xff]  ;;  %v47_v1 = vld [vmem:[#allocation3 + $0x8] sm:$0xff]  ;;  %v254_v28 = vmov 0.75   ;;  %s255_s1 = smov [#allocation8]  }
  0x27   :  { %v52_v2 = vand.u32 2147483647, %v46_v0  ;;  %v53_v3 = vand.u32 2147483647, %v47_v1  ;;  %v48_v14 = vld [vmem:[#allocation6] sm:$0xff]  ;;  %v49_v15 = vld [vmem:[#allocation6 + $0x8] sm:$0xff] }
  0x28   :  { %vm50_vm0 = vcmp.eq.f32.partialorder %v48_v14, 1.0  ;;  %v94_v19 = vmax.f32 %v46_v0, 0.0  ;;  %v95_v21 = vmax.f32 %v47_v1, 0.0  ;;  %vm51_vm1 = vcmp.eq.f32.partialorder %v49_v15, 1.0  ;;  %s148_s6 = sshll.u32 %s255_s1, 4  ;;  %s149_s6 = int_to_ptr.vmem [resolvable:$true] %s148_s6 }
  0x29   :  { %v54_v4 = vsub.f32 0.0, %v52_v2  ;;  %v55_v5 = vsub.f32 0.0, %v53_v3  ;;  %vm66_vm2 = vcmp.ge.f32.partialorder %v46_v0, 0.0  ;;  %vm67_vm3 = vcmp.ge.f32.partialorder %v47_v1, 0.0  ;;  %s222_s9 = scalar_lea.vmem %s149_s6, 128  ;;  %p227_p3 = scmp.lt.s32.totalorder %s149_s6, %s149_s6 }
  0x2a   :  { %v90_v23 = vmin.f32 %v46_v0, 0.0  ;;  %v91_v27 = vmin.f32 %v47_v1, 0.0  ;;  %v106_v29 = vsel %vm50_vm0, 0.25, %v254_v28  ;;  %v96_v33 = vsub.f32 0.0, %v94_v19  ;;  %p223_p2 = scmp.ne.s32.totalorder %s149_s6, %s222_s9  ;;  %p228_p4 = scmp.lt.s32.totalorder %s222_s9, %s222_s9 }
  0x2b   :  { %v56_v6 = vmul.f32 1.442695, %v54_v4  ;;  %v58_v7 = vmul.f32 1.442695, %v55_v5  ;;  %v97_v37 = vsub.f32 0.0, %v95_v21  ;;  %v107_v45 = vsel %vm51_vm1, 0.25, %v254_v28 }
  0x2c   :  { %v108_v53 = vsub.f32 0.0, %v106_v29  ;;  %v109_v54 = vsub.f32 0.0, %v107_v45  ;;  %p229_p5 = por %p228_p4, %p227_p3 }
  0x2d   :  { %166 = vpow2.f32 %v56_v6 }
  0x2e   :  { %168 = vpow2.f32 %v58_v7  ;;  %p230_p6 = pnand %p229_p5, %p223_p2 }
  0x37   :  { %v167_v8 = vpop.eup %166 }
  0x38   :  { %v169_v9 = vpop.eup %168  ;;  %v60_v10 = vadd.f32 1.0, %v167_v8  ;;  %v75_v12 = vmul.f32 -0.5, %v167_v8  ;;  %v78_v17 = vand.u32 2147483647, %v167_v8 }
  0x39   :  { %v61_v11 = vadd.f32 1.0, %v169_v9  ;;  %v84_v13 = vmul.f32 -0.5, %v169_v9  ;;  %v87_v20 = vand.u32 2147483647, %v169_v9 }
  0x3a   :  { %170 = vrcp.f32 %v60_v10  ;;  %v76_v16 = vadd.f32 1.0, %v75_v12  ;;  %vm79_vm4 = vcmp.lt.f32.partialorder %v78_v17, 0.0004427343 }
  0x3b   :  { %172 = vrcp.f32 %v61_v11  ;;  %v85_v18 = vadd.f32 1.0, %v84_v13  ;;  %vm88_vm5 = vcmp.lt.f32.partialorder %v87_v20, 0.0004427343 }
  0x3c   :  { %174 = vlog2.f32 %v60_v10  ;;  %v77_v26 = vmul.f32 %v167_v8, %v76_v16 }
  0x3d   :  { %176 = vlog2.f32 %v61_v11  ;;  %v86_v32 = vmul.f32 %v169_v9, %v85_v18 }
  0x44   :  { %v171_v22 = vpop.eup %170 }
  0x45   :  { %v173_v24 = vpop.eup %172  ;;  %v68_v25 = vmul.f32 %v171_v22, %v167_v8 }
  0x46   :  { %v175_v30 = vpop.eup %174  ;;  %v69_v31 = vmul.f32 %v173_v24, %v169_v9 }
  0x47   :  { %v177_v34 = vpop.eup %176  ;;  %v70_v35 = vsel %vm66_vm2, %v171_v22, %v68_v25  ;;  %v74_v36 = vmul.f32 0.6931472, %v175_v30 }
  0x48   :  { %v71_v38 = vsel %vm67_vm3, %v173_v24, %v69_v31  ;;  %v83_v39 = vmul.f32 0.6931472, %v177_v34  ;;  %v100_v40 = vsub.f32 1.0, %v70_v35  ;;  %v102_v41 = vmul.f32 %v70_v35, %v70_v35 }
  0x49   :  { %v80_v42 = vsel %vm79_vm4, %v77_v26, %v74_v36  ;;  %v101_v43 = vsub.f32 1.0, %v71_v38  ;;  %v103_v44 = vmul.f32 %v71_v38, %v71_v38 }
  0x4a   :  { %v89_v46 = vsel %vm88_vm5, %v86_v32, %v83_v39  ;;  %v92_v47 = vsub.f32 %v90_v23, %v80_v42  ;;  %v98_v48 = vsub.f32 %v96_v33, %v80_v42  ;;  %v104_v49 = vmul.f32 %v100_v40, %v100_v40 }
  0x4b   :  { %v93_v50 = vsub.f32 %v91_v27, %v89_v46  ;;  %v99_v51 = vsub.f32 %v97_v37, %v89_v46  ;;  %v105_v52 = vmul.f32 %v101_v43, %v101_v43 }
  0x4c   :  { %v110_v55 = vmul.f32 %v104_v49, %v92_v47  ;;  %v112_v56 = vmul.f32 %v102_v41, %v98_v48 }
  0x4d   :  { %v111_v57 = vmul.f32 %v105_v52, %v93_v50  ;;  %v113_v58 = vmul.f32 %v103_v44, %v99_v51 }
  0x4e   :  { %v114_v59 = vsel %vm50_vm0, %v110_v55, %v112_v56 }
  0x4f   :  { %v115_v60 = vsel %vm51_vm1, %v111_v57, %v113_v58  ;;  %v116_v61 = vmul.f32 %v114_v59, %v108_v53 }
  0x50   :  { %v117_v62 = vmul.f32 %v115_v60, %v109_v54 }
  0x52   :  { %v129_v63 = vadd.f32 %v117_v62, %v116_v61 }
  0x54   :  { %130 = vadd.xlane.f32.xlu0 %v129_v63 }
  0xe1   :  { %v131_v0 = vpop.xlane.xlu0 %130 }
  0xe2   :  { %v132_v1 = vrot.slane %v131_v0, 4 }
  0xe4   :  { %v133_v2 = vadd.f32 %v132_v1, %v131_v0 }
  0xe6   :  { %v134_v3 = vrot.slane %v133_v2, 2 }
  0xe8   :  { %v135_v4 = vadd.f32 %v134_v3, %v133_v2 }
  0xea   :  { %v136_v5 = vrot.slane %v135_v4, 1 }
  0xec   :  { %v137_v6 = vadd.f32 %v136_v5, %v135_v4 }
  0xee   :  { %158 = vpush %v137_v6 }
 0x11f   :  { %s159_s7 = spop %158 }
 0x120   :  { %s139_s8 = smul.f32 0.00048828125, %s159_s7 }
 0x122   :  { %v140_v7 = vstv %s139_s8 }
 0x123   :  { %141 = vst [vmem:[#allocation8] sm:$0xff] %v140_v7 }
 0x124   :  { %233 = shalt.err (!%p230_p6)
}
 0x125   :  { %s234_s12 = scalar_lea.hbm %s314_s2, 128 }
 0x126   :  { %p235_p7 = scmp.ne.s32.totalorder %s314_s2, %s234_s12  ;;  %p238_p8 = scmp.lt.u32.totalorder %s234_s12, %s314_s2 }
 0x128   :  { %p240_p9 = pnand %p238_p8, %p235_p7 }
 0x12a   :  { %243 = shalt.err (!%p240_p9)
}
 0x12b   :  { %151 = dma.vmem_to_hbm [thread:$0]  %s149_s6, 128, %s314_s2, [#allocation5]  }
 0x12c   :  { %248 = dma.done.wait [#allocation5], 128  }
 0x12d   :  { %249 = vsyncadd [#allocation5], 4294967168 }
 0x12e   :  { %155 = vsyncpa [#allocation4], 1 }
 0x12f   :  { %156 = vsyncpa [#allocation7], 1 }
 0x130   :  { %157 = vsyncpa [#allocation5], 1 }

</bundles_post_ra>
